<compile_context>
chip_gen: v5e
topology: v5e:2x2
jax: 0.10.0
libtpu: 0.0.40
codegen_flags: <defaults>
</compile_context>

<pallas_src>
import jax
import jax.numpy as jnp
from jax.experimental import pallas as pl
from jax.experimental.pallas import tpu as pltpu

SIGMA = 1e-5
BASE_DIM = 32          # logical hidden width of the stand-in model
N_CLASSES = 10
TB_MAX = 32            # samples per grid block (cap)
CHW_MAX = 1024         # pixels (lanes) per grid chunk (cap)


def fm_loss_kernel(lat_ref, noi_ref, ab_ref, cmat_ref, wcols_ref, w2t_ref,
                   out_ref, h_ref):
    # lat_ref / noi_ref : (TB, CHW) f32      pixels on lanes, samples on sublanes
    # ab_ref            : (TB, 2)   f32      per-sample [a, b] = [1-(1-s)t, t]
    # cmat_ref          : (D, TB)   f32      per-sample conditioning bias columns
    # wcols_ref         : (D, 4)    f32      [w1 | b2 | w3 | b3(replicated)]
    # w2t_ref           : (D, D)    bf16     w2^T
    # out_ref           : (1, CHW)  f32      lane-dense partial SSE for this step
    # h_ref             : (D, TB*CHW) bf16   VMEM scratch: staged layer-1 acts
    lat = lat_ref[...]
    noi = noi_ref[...]
    ab = ab_ref[...]
    cmat = cmat_ref[...]
    wc = wcols_ref[...]

    w1c = wc[:, 0:1]                              # (D, 1)
    b2c = wc[:, 1:2]
    w3c = wc[:, 2:3]
    b3 = wc[0:1, 3:4]                             # (1, 1)

    tb, chw = lat.shape

    # Flow-matching interpolation + regression target, full (TB, CHW) tiles.
    a_col = ab[:, 0:1]                            # (TB, 1)
    b_col = ab[:, 1:2]
    x_t = a_col * noi + b_col * lat               # (TB, CHW)
    target = lat - (1.0 - SIGMA) * noi            # (TB, CHW)

    # Stage layer-1 activations for ALL samples as one (D, TB*CHW) bf16 slab
    # (static lane offsets; per-iteration intermediates are small and consumed
    # immediately by the scratch store).
    for s in range(tb):
        xrow = x_t[s:s + 1, :]                    # (1, CHW)
        ccol = cmat[:, s:s + 1]                   # (D, 1)
        hs = jnp.maximum(w1c * xrow + ccol, 0.0)  # (D, CHW) f32
        h_ref[:, s * chw:(s + 1) * chw] = hs.astype(jnp.bfloat16)

    # Single batched MXU matmul: bf16 operands, f32 accumulation.
    h2 = jnp.dot(w2t_ref[...], h_ref[...],
                 preferred_element_type=jnp.float32)          # (D, TB*CHW)
    h2 = jnp.maximum(h2 + b2c, 0.0)

    # Output projection: VPU multiply + cross-sublane (XLU) reduce.
    v = jnp.sum(h2 * w3c, axis=0, keepdims=True) + b3         # (1, TB*CHW)

    # Per-block partial SSE accumulated into one lane-dense (1, CHW) tile.
    acc = jnp.zeros((1, chw), jnp.float32)
    for s in range(tb):
        ds = v[:, s * chw:(s + 1) * chw] - target[s:s + 1, :]
        acc = acc + ds * ds
    out_ref[...] = acc


def _pick_tb(batch, cap=TB_MAX):
    divs = [d for d in range(1, batch + 1) if batch % d == 0 and d <= cap]
    pref = [d for d in divs if batch // d >= 2]   # keep >= 2 blocks for v7x
    pool = pref if pref else divs
    return max(pool)


def _pick_chw(hw, cap=CHW_MAX):
    if hw <= cap:
        return hw
    for c in range(cap, 127, -128):
        if hw % c == 0:
            return c
    return hw


def flow_matching_loss(latent, labels, noise, time, params):
    """latent/noise: (B, 1, H, W) f32, labels: (B,) i32, time: (B,) f32."""
    B, C, H, W = latent.shape
    assert C == 1
    HW = H * W
    assert HW % 128 == 0, "spatial size must give HW multiple of 128"
    D = BASE_DIM

    TB = _pick_tb(B)
    nblocks = B // TB
    CHW = _pick_chw(HW)
    nchunks = HW // CHW

    lat = latent.reshape(nblocks, TB, HW).astype(jnp.float32)
    noi = noise.reshape(nblocks, TB, HW).astype(jnp.float32)

    # Per-sample scalars (wrapper-side, O(B)).
    t = time.astype(jnp.float32)
    a = 1.0 - (1.0 - SIGMA) * t
    ab = jnp.stack([a, t], axis=-1).reshape(nblocks, TB, 2)

    # Per-sample conditioning bias c = b1 + cls_emb + t*wt + bt, laid out with
    # the hidden dim on sublanes and samples on lanes: (nblocks, D, TB).
    cls = params["class_emb"][labels].astype(jnp.float32)              # (B, D)
    c = (params["b1"].reshape(1, D) + cls
         + t[:, None] * params["wt"].reshape(1, D)
         + params["bt"].reshape(1, D))                                 # (B, D)
    cmat = c.reshape(nblocks, TB, D).transpose(0, 2, 1)                # (nb, D, TB)

    # Shared weights packed into one small (D, 4) column table + bf16 w2^T.
    wcols = jnp.stack(
        [params["w1"].reshape(D).astype(jnp.float32),
         params["b2"].reshape(D).astype(jnp.float32),
         params["w3"].reshape(D).astype(jnp.float32),
         jnp.full((D,), params["b3"].reshape(()), jnp.float32)],
        axis=-1)                                                       # (D, 4)
    w2t = params["w2"].T.astype(jnp.bfloat16)                          # (D, D)

    out = pl.pallas_call(
        fm_loss_kernel,
        out_shape=jax.ShapeDtypeStruct((nblocks, nchunks, 1, CHW), jnp.float32),
        grid=(nblocks, nchunks),
        in_specs=[
            pl.BlockSpec((None, TB, CHW), lambda b, hc: (b, 0, hc)),   # latent
            pl.BlockSpec((None, TB, CHW), lambda b, hc: (b, 0, hc)),   # noise
            pl.BlockSpec((None, TB, 2), lambda b, hc: (b, 0, 0)),      # a, b
            pl.BlockSpec((None, D, TB), lambda b, hc: (b, 0, 0)),      # cond bias
            pl.BlockSpec((D, 4), lambda b, hc: (0, 0)),                # col params
            pl.BlockSpec((D, D), lambda b, hc: (0, 0)),                # w2^T bf16
        ],
        out_specs=pl.BlockSpec((None, None, 1, CHW), lambda b, hc: (b, hc, 0, 0)),
        scratch_shapes=[pltpu.VMEM((D, TB * CHW), jnp.bfloat16)],
        compiler_params=pltpu.CompilerParams(
            dimension_semantics=("parallel", "parallel"),
            vmem_limit_bytes=32 << 20),
    )(lat, noi, ab, cmat, wcols, w2t)

    total_sse = jnp.sum(out)
    return total_sse / (B * C * H * W)


def reference_loss(latent, labels, noise, time, params):
    """Pure-JAX (f32) reference of the same forward semantics."""
    B, C, H, W = latent.shape
    HW = H * W
    x = latent.reshape(B, HW, 1)
    n = noise.reshape(B, HW, 1)
    t = time.reshape(B, 1, 1)
    x_t = (1.0 - (1.0 - SIGMA) * t) * n + t * x
    target = x - (1.0 - SIGMA) * n
    cls = params["class_emb"][labels].reshape(B, 1, BASE_DIM)
    h = x_t * params["w1"] + params["b1"] + cls + t * params["wt"] + params["bt"]
    h = jnp.maximum(h, 0.0)
    h2 = jnp.maximum(jnp.einsum("bpd,de->bpe", h, params["w2"]) + params["b2"], 0.0)
    v = jnp.einsum("bpd,do->bpo", h2, params["w3"]) + params["b3"]
    return jnp.mean((v - target) ** 2)


def init_params(key):
    D = BASE_DIM
    ks = jax.random.split(key, 5)
    return {
        "w1": (jax.random.normal(ks[0], (1, D), jnp.float32) * 0.1),
        "b1": jnp.zeros((1, D), jnp.float32),
        "wt": (jax.random.normal(ks[1], (1, D), jnp.float32) * 0.1),
        "bt": jnp.zeros((1, D), jnp.float32),
        "w2": (jax.random.normal(ks[2], (D, D), jnp.float32) / jnp.sqrt(D)),
        "b2": jnp.zeros((1, D), jnp.float32),
        "w3": (jax.random.normal(ks[3], (D, 1), jnp.float32) / jnp.sqrt(D)),
        "b3": jnp.zeros((1, 1), jnp.float32),
        "class_emb": (jax.random.normal(ks[4], (N_CLASSES, D), jnp.float32) * 0.1),
    }


if __name__ == "__main__":
    B, C, H, W = 2, 1, 16, 16
    key = jax.random.PRNGKey(0)
    k_param, k_lat, k_noise, k_time, k_lbl = jax.random.split(key, 5)

    params = init_params(k_param)
    latent = jax.random.normal(k_lat, (B, C, H, W), jnp.float32)
    noise = jax.random.normal(k_noise, (B, C, H, W), jnp.float32)  # randn_like
    time = jax.random.uniform(k_time, (B,), jnp.float32)           # rand(B)
    labels = jax.random.randint(k_lbl, (B,), 0, N_CLASSES, jnp.int32)

    loss = flow_matching_loss(latent, labels, noise, time, params)
    loss = jax.block_until_ready(loss)

    ref = reference_loss(latent, labels, noise, time, params)
    assert jnp.isfinite(loss), "kernel produced non-finite loss"
    # bf16 matmul operands (f32 accumulate) give ~0.1-0.3% relative deviation.
    assert abs(float(loss) - float(ref)) < 1e-2 * max(1.0, abs(float(ref))), (
        f"mismatch: kernel={float(loss)} ref={float(ref)}")

    print("KERNEL_OK")
</pallas_src>

<mosaic_0001>
module attributes {stable_mosaic.version = 11 : i64} {
  func.func @fm_loss_kernel(%arg0: i32, %arg1: i32, %arg2: memref<1x1x256xf32, #tpu.memory_space<vmem>>, %arg3: memref<1x1x256xf32, #tpu.memory_space<vmem>>, %arg4: memref<1x1x2xf32, #tpu.memory_space<vmem>>, %arg5: memref<1x32x1xf32, #tpu.memory_space<vmem>>, %arg6: memref<32x4xf32, #tpu.memory_space<vmem>>, %arg7: memref<32x32xbf16, #tpu.memory_space<vmem>>, %arg8: memref<1x1x1x256xf32, #tpu.memory_space<vmem>>, %arg9: memref<32x256xbf16, #tpu.memory_space<vmem>>) attributes {dimension_semantics = [#tpu.dimension_semantics<parallel>, #tpu.dimension_semantics<parallel>], iteration_bounds = array<i64: 2, 1>, scalar_prefetch = 0 : i64, scratch_operands = 1 : i64, tpu.core_type = #tpu.core_type<tc>, window_params = [{transform_indices = @transform_0, window_bounds = array<i64: 1, 1, 256>}, {transform_indices = @transform_1, window_bounds = array<i64: 1, 1, 256>}, {transform_indices = @transform_2, window_bounds = array<i64: 1, 1, 2>}, {transform_indices = @transform_3, window_bounds = array<i64: 1, 32, 1>}, {pipeline_mode = #tpu.pipeline_mode<synchronous>, transform_indices = @transform_4, window_bounds = array<i64: 32, 4>}, {pipeline_mode = #tpu.pipeline_mode<synchronous>, transform_indices = @transform_5, window_bounds = array<i64: 32, 32>}, {transform_indices = @transform_6, window_bounds = array<i64: 1, 1, 1, 256>}]} {
    %c0 = arith.constant 0 : index
    %c0_0 = arith.constant 0 : index
    %c0_1 = arith.constant 0 : index
    %0 = vector.load %arg2[%c0, %c0_0, %c0_1] : memref<1x1x256xf32, #tpu.memory_space<vmem>>, vector<1x1x256xf32>
    %1 = vector.shape_cast %0 : vector<1x1x256xf32> to vector<1x256xf32>
    %c0_2 = arith.constant 0 : index
    %c0_3 = arith.constant 0 : index
    %c0_4 = arith.constant 0 : index
    %2 = vector.load %arg3[%c0_2, %c0_3, %c0_4] : memref<1x1x256xf32, #tpu.memory_space<vmem>>, vector<1x1x256xf32>
    %3 = vector.shape_cast %2 : vector<1x1x256xf32> to vector<1x256xf32>
    %c0_5 = arith.constant 0 : index
    %c0_6 = arith.constant 0 : index
    %c0_7 = arith.constant 0 : index
    %4 = vector.load %arg4[%c0_5, %c0_6, %c0_7] : memref<1x1x2xf32, #tpu.memory_space<vmem>>, vector<1x1x2xf32>
    %5 = vector.shape_cast %4 : vector<1x1x2xf32> to vector<1x2xf32>
    %c0_8 = arith.constant 0 : index
    %c0_9 = arith.constant 0 : index
    %c0_10 = arith.constant 0 : index
    %6 = vector.load %arg5[%c0_8, %c0_9, %c0_10] : memref<1x32x1xf32, #tpu.memory_space<vmem>>, vector<1x32x1xf32>
    %7 = vector.shape_cast %6 : vector<1x32x1xf32> to vector<32x1xf32>
    %c0_11 = arith.constant 0 : index
    %c0_12 = arith.constant 0 : index
    %8 = vector.load %arg6[%c0_11, %c0_12] : memref<32x4xf32, #tpu.memory_space<vmem>>, vector<32x4xf32>
    %9 = vector.extract_strided_slice %8 {offsets = [0, 0], sizes = [32, 1], strides = [1, 1]} : vector<32x4xf32> to vector<32x1xf32>
    %10 = vector.extract_strided_slice %8 {offsets = [0, 1], sizes = [32, 1], strides = [1, 1]} : vector<32x4xf32> to vector<32x1xf32>
    %11 = vector.extract_strided_slice %8 {offsets = [0, 2], sizes = [32, 1], strides = [1, 1]} : vector<32x4xf32> to vector<32x1xf32>
    %12 = vector.extract_strided_slice %8 {offsets = [0, 3], sizes = [1, 1], strides = [1, 1]} : vector<32x4xf32> to vector<1x1xf32>
    %13 = vector.extract_strided_slice %5 {offsets = [0, 0], sizes = [1, 1], strides = [1, 1]} : vector<1x2xf32> to vector<1x1xf32>
    %14 = vector.extract_strided_slice %5 {offsets = [0, 1], sizes = [1, 1], strides = [1, 1]} : vector<1x2xf32> to vector<1x1xf32>
    %15 = vector.broadcast %13 : vector<1x1xf32> to vector<1x256xf32>
    %16 = arith.mulf %15, %3 : vector<1x256xf32>
    %17 = vector.broadcast %14 : vector<1x1xf32> to vector<1x256xf32>
    %18 = arith.mulf %17, %1 : vector<1x256xf32>
    %19 = arith.addf %16, %18 : vector<1x256xf32>
    %cst = arith.constant 0.999989986 : f32
    %20 = vector.broadcast %cst : f32 to vector<1x256xf32>
    %21 = arith.mulf %20, %3 : vector<1x256xf32>
    %22 = arith.subf %1, %21 : vector<1x256xf32>
    %23 = vector.broadcast %9 : vector<32x1xf32> to vector<32x256xf32>
    %24 = vector.broadcast %19 : vector<1x256xf32> to vector<32x256xf32>
    %25 = arith.mulf %23, %24 : vector<32x256xf32>
    %26 = vector.broadcast %7 : vector<32x1xf32> to vector<32x256xf32>
    %27 = arith.addf %25, %26 : vector<32x256xf32>
    %cst_13 = arith.constant 0.000000e+00 : f32
    %28 = vector.broadcast %cst_13 : f32 to vector<32x256xf32>
    %29 = arith.maximumf %27, %28 : vector<32x256xf32>
    %30 = arith.truncf %29 : vector<32x256xf32> to vector<32x256xbf16>
    %c0_14 = arith.constant 0 : index
    %c0_15 = arith.constant 0 : index
    %31 = vector.load %arg9[%c0_14, %c0_15] : memref<32x256xbf16, #tpu.memory_space<vmem>>, vector<32x256xbf16>
    tpu.vector_store %arg9[%c0_14, %c0_15], %30 {strides = array<i32>} : memref<32x256xbf16, #tpu.memory_space<vmem>>, vector<32x256xbf16>,
    %c0_16 = arith.constant 0 : index
    %c0_17 = arith.constant 0 : index
    %32 = vector.load %arg7[%c0_16, %c0_17] : memref<32x32xbf16, #tpu.memory_space<vmem>>, vector<32x32xbf16>
    %c0_18 = arith.constant 0 : index
    %c0_19 = arith.constant 0 : index
    %33 = vector.load %arg9[%c0_18, %c0_19] : memref<32x256xbf16, #tpu.memory_space<vmem>>, vector<32x256xbf16>
    %cst_20 = arith.constant dense<0.000000e+00> : vector<32x256xf32>
    %34 = tpu.matmul %32, %33, %cst_20 {dimension_numbers = #tpu.dot_dimension_numbers<[1], [0], [0], [1], [0, 0, 1, 1], [], []>} : vector<32x32xbf16>, vector<32x256xbf16>, vector<32x256xf32> -> vector<32x256xf32>
    %35 = vector.broadcast %10 : vector<32x1xf32> to vector<32x256xf32>
    %36 = arith.addf %34, %35 : vector<32x256xf32>
    %cst_21 = arith.constant 0.000000e+00 : f32
    %37 = vector.broadcast %cst_21 : f32 to vector<32x256xf32>
    %38 = arith.maximumf %36, %37 : vector<32x256xf32>
    %39 = vector.broadcast %11 : vector<32x1xf32> to vector<32x256xf32>
    %40 = arith.mulf %38, %39 : vector<32x256xf32>
    %cst_22 = arith.constant dense<0.000000e+00> : vector<256xf32>
    %41 = vector.multi_reduction <add>, %40, %cst_22 [0] : vector<32x256xf32> to vector<256xf32>
    %42 = vector.shape_cast %41 : vector<256xf32> to vector<1x256xf32>
    %43 = vector.broadcast %12 : vector<1x1xf32> to vector<1x256xf32>
    %44 = arith.addf %42, %43 : vector<1x256xf32>
    %cst_23 = arith.constant 0.000000e+00 : f32
    %45 = vector.broadcast %cst_23 : f32 to vector<1x256xf32>
    %46 = arith.subf %44, %22 : vector<1x256xf32>
    %47 = arith.mulf %46, %46 : vector<1x256xf32>
    %48 = arith.addf %45, %47 : vector<1x256xf32>
    %c0_24 = arith.constant 0 : index
    %c0_25 = arith.constant 0 : index
    %c0_26 = arith.constant 0 : index
    %c0_27 = arith.constant 0 : index
    %49 = vector.load %arg8[%c0_24, %c0_25, %c0_26, %c0_27] : memref<1x1x1x256xf32, #tpu.memory_space<vmem>>, vector<1x1x1x256xf32>
    %50 = vector.shape_cast %49 : vector<1x1x1x256xf32> to vector<1x256xf32>
    %51 = vector.shape_cast %48 : vector<1x256xf32> to vector<1x1x1x256xf32>
    tpu.vector_store %arg8[%c0_24, %c0_25, %c0_26, %c0_27], %51 {strides = array<i32>} : memref<1x1x1x256xf32, #tpu.memory_space<vmem>>, vector<1x1x1x256xf32>,
    return
  }
  func.func @transform_0(%arg0: i32, %arg1: i32) -> (i32, i32, i32) {
    %c0_i32 = arith.constant 0 : i32
    %c0_i32_0 = arith.constant 0 : i32
    return %arg0, %c0_i32, %arg1 : i32, i32, i32
  }
  func.func @transform_1(%arg0: i32, %arg1: i32) -> (i32, i32, i32) {
    %c0_i32 = arith.constant 0 : i32
    %c0_i32_0 = arith.constant 0 : i32
    return %arg0, %c0_i32, %arg1 : i32, i32, i32
  }
  func.func @transform_2(%arg0: i32, %arg1: i32) -> (i32, i32, i32) {
    %c0_i32 = arith.constant 0 : i32
    %c0_i32_0 = arith.constant 0 : i32
    %c0_i32_1 = arith.constant 0 : i32
    return %arg0, %c0_i32, %c0_i32_0 : i32, i32, i32
  }
  func.func @transform_3(%arg0: i32, %arg1: i32) -> (i32, i32, i32) {
    %c0_i32 = arith.constant 0 : i32
    %c0_i32_0 = arith.constant 0 : i32
    %c0_i32_1 = arith.constant 0 : i32
    return %arg0, %c0_i32, %c0_i32_0 : i32, i32, i32
  }
  func.func @transform_4(%arg0: i32, %arg1: i32) -> (i32, i32) {
    %c0_i32 = arith.constant 0 : i32
    %c0_i32_0 = arith.constant 0 : i32
    %c0_i32_1 = arith.constant 0 : i32
    return %c0_i32, %c0_i32_0 : i32, i32
  }
  func.func @transform_5(%arg0: i32, %arg1: i32) -> (i32, i32) {
    %c0_i32 = arith.constant 0 : i32
    %c0_i32_0 = arith.constant 0 : i32
    %c0_i32_1 = arith.constant 0 : i32
    return %c0_i32, %c0_i32_0 : i32, i32
  }
  func.func @transform_6(%arg0: i32, %arg1: i32) -> (i32, i32, i32, i32) {
    %c0_i32 = arith.constant 0 : i32
    %c0_i32_0 = arith.constant 0 : i32
    %c0_i32_1 = arith.constant 0 : i32
    return %arg0, %arg1, %c0_i32, %c0_i32_0 : i32, i32, i32, i32
  }
}

</mosaic_0001>

<bundles_post_ra>
// kernel: tpu_custom_call.1
= control target key start
LH: loop header
LB: loop body
LE: loop exit
PB: predicated region body
PF: predicated region fallthrough
CT: control target
= control target key end

     0   :  { %11 = vsyncpa [#allocation4], 0  ;;  %s1137_s0 = inlined_call_operand.vmem [shape: f32[2,1,256], index: 0, kind: input, shape index: {}]   ;;  %s1138_s1 = inlined_call_operand.vmem [shape: f32[2,1,256], index: 1, kind: input, shape index: {}]   ;;  %s1139_s2 = inlined_call_operand.vmem [shape: f32[2,1,2], index: 2, kind: input, shape index: {}]   ;;  %s1140_s3 = inlined_call_operand.vmem [shape: f32[2,32,1], index: 3, kind: input, shape index: {}]   ;;  %s1141_s4 = inlined_call_operand.vmem [shape: f32[32,4], index: 4, kind: input, shape index: {}]   ;;  %s1142_s5 = inlined_call_operand.vmem [shape: bf16[32,32], index: 5, kind: input, shape index: {}]   ;;  %s1143_s6 = inlined_call_operand.hbm [shape: f32[2,1,1,256], index: 6, kind: output, shape index: {}]  }
   0x1   :  { %13 = vsyncpa [#allocation4 + $0x1], 0  ;;  %s994_s21 = smov 0   ;;  %s996_s22 = smov 0  }
   0x2   :  { %s998_s23 = smov 0   ;;  %s1000_s24 = smov 0  }
   0x3   :  { %s1002_s25 = smov 0   ;;  %s1004_s26 = smov 0  }
   0x4 LB: > { %s752_s27 = sadd.s32 4294967295, %s953_s26   ;;  %s753_s28 = sadd.s32 4294967294, %s953_s26   ;;  %s953_s26 = sphi %s1004_s26, %s19_s26   ;;  %s949_s25 = sphi %s1002_s25, %s1150_s25   ;;  %s945_s24 = sphi %s1000_s24, %s1149_s24   ;;  %s941_s23 = sphi %s998_s23, %s1148_s23   ;;  %s937_s22 = sphi %s996_s22, %s1147_s22   ;;  %s933_s21 = sphi %s994_s21, %s1146_s21  }
   0x5   : > { %s31_s29 = sadd.s32 1, %s949_s25  ;;  %s190_s30 = sadd.s32 1, %s941_s23 }
   0x6   : > { %p33_p0 = scmp.ge.s32.totalorder %s31_s29, 2  ;;  %p200_p1 = scmp.ne.s32.totalorder %s941_s23, %s937_s22 }
   0x7   : > { %p201_p2 = scmp.eq.s32.totalorder %s752_s27, 1  ;;  %p206_p3 = scmp.ne.s32.totalorder %s937_s22, %s933_s21 }
   0x8   : > { %s1152_s29 = smov (%p33_p0, %s31_s29), 0  ;;  %p207_p5 = scmp.eq.s32.totalorder %s753_s28, 1 }
   0x9   : > { %p1034_p4 = por %p201_p2, %p200_p1  ;;  %s185_s8 = ssub.s32 %s949_s25, %s1152_s29 }
   0xa   : > { %p756_p6 = scmp.ge.s32.totalorder %s953_s26, 1  ;;  %p188_p7 = scmp.eq.s32.totalorder %s185_s8, 0 }
   0xb   : > { %p1041_p8 = por %p207_p5, %p206_p3  ;;  %p269_p9 = scmp.lt.s32.totalorder %s953_s26, 3 }
   0xc   : > { %s1047_s10 = scalar_select %p188_p7, %s941_s23, %s190_s30  }
   0xd   : > { %p270_p10 = pnand %p756_p6, %p269_p9 }
   0xe   : > { %p319_p11 = scmp.lt.s32.totalorder (!%p270_p10), %s945_s24, 1  ;;  %s315_s8 = sand.u32 (!%p270_p10), 1, %s937_s22  }
   0xf   : > { %273 = sbr.rel (%p270_p10) target bundleno = 355 (0x163), region = 44  ;;  %s757_s11 = sshll.u32 (!%p270_p10), %s315_s8, 1 }
  0x10   : > { %s791_s12 = sshll.u32 (!%p270_p10), %s945_s24, 1  ;;  %s895_s30 = scalar_lea.hbm (!%p270_p10), %s1143_s6, 4 }
  0x14   : > { %v1052_v0 = vld [vmem:[%s1141_s4 + $0x10] sm:$0xff]  ;;  %v955_v1 = vmov 0   ;;  %s1057_s13 = scalar_select %p319_p11, %s945_s24, 1  ;;  %v1070_v4 = vld [vmem:[%s1141_s4 + $0x18] sm:$0xff]  ;;  %v956_v6 = vmov 1   ;;  %v352_v7 = vld [vmem:[%s1141_s4] sm:$0xff] }
  0x15   : > { %866 = vset.pattern.permute.xlu1 %v955_v1  ;;  %864 = vset.pattern.permute.xlu0 %v955_v1  ;;  %v353_v8 = vld [vmem:[%s1141_s4 + $0x8] sm:$0xff]  ;;  %v957_v27 = vmov 2   ;;  %v958_v30 = vmov 3   ;;  %vm503_vm0 = vcmask 261120   ;;  %vm618_vm1 = vcmask 1040384   ;;  %s627_s24 = scalar_lea.sflag [#allocation4], %s315_s8 }
  0x16   : > { %384 = vperm.xlu1 %866, %v1052_v0   ;;  %867 = vset.pattern.permute.xlu2 %v955_v1  ;;  %s338_s16 = scalar_lea.vmem %s1139_s2, %s1057_s13  ;;  %s794_s17 = sshll.u32 %s1057_s13, 5 }
  0x17   : > { %v347_v2 = vld [vmem:[%s338_s16] sm:$0x1]  ;;  %s343_s20 = scalar_lea.vmem %s1140_s3, %s794_s17  ;;  %s758_s14 = sshll.u32 %s1057_s13, 1 }
  0x18   : > { %358 = vperm.xlu0 %864, %v347_v2   ;;  %v350_v3 = vld [vmem:[%s343_s20 + $0x10] sm:$0xff]  ;;  %v351_v5 = vld [vmem:[%s343_s20 + $0x18] sm:$0xff]  ;;  %v348_v9 = vld [vmem:[%s343_s20] sm:$0xff]  ;;  %s334_s17 = scalar_lea.vmem %s1138_s1, %s758_s14  ;;  %s639_s16 = scalar_lea.hbm %s1143_s6, %s791_s12 }
  0x19   : > { %417 = vperm.xlu2 %867, %v350_v3   ;;  %v349_v10 = vld [vmem:[%s343_s20 + $0x8] sm:$0xff]  ;;  %v346_v11 = vld [vmem:[%s334_s17] sm:$0x3]  ;;  %s325_s20 = scalar_lea.vmem %s1137_s0, %s758_s14  ;;  %s317_s17 = scalar_lea.vmem [#allocation3], %s757_s11 }
  0x1a   : > { %v370_v12 = vmul.f32 0.99999, %v346_v11  ;;  %v345_v13 = vld [vmem:[%s325_s20] sm:$0x3]  ;;  %s641_s18 = sshll.u32 %s317_s17, 4  ;;  %s643_s19 = sshll.u32 %s639_s16, 4  ;;  %s642_s18 = int_to_ptr.vmem [resolvable:$true] %s641_s18  ;;  %s644_s19 = int_to_ptr.hbm [resolvable:$true] %s643_s19 }
  0x1b   : > { %s889_s20 = sshra.s32 %s644_s19, 4  ;;  %s890_s20 = int_to_ptr.hbm [resolvable:$true] %s889_s20 }
  0x1c   : > { %v1088_v14 = vsub.f32 %v345_v13, %v370_v12  ;;  %s891_s13 = scalar_lea.hbm %s890_s20, 2  ;;  %p896_p1 = scmp.lt.s32.totalorder %s890_s20, %s1143_s6 }
  0x1d   : > { %p892_p12 = scmp.ne.s32.totalorder %s890_s20, %s891_s13  ;;  %p897_p2 = scmp.lt.s32.totalorder %s895_s30, %s891_s13 }
  0x1e   : > { %389 = vperm.xlu1 %866, %v1070_v4  }
  0x1f   : > { %p893_p13 = pnand %p892_p12, %p1034_p4  ;;  %p898_p3 = por %p897_p2, %p896_p1 }
  0x20   : > { %865 = vset.pattern.permute.xlu0 %v956_v6 }
  0x21   : > { %364 = vperm.xlu0 %865, %v347_v2   ;;  %422 = vperm.xlu2 %867, %v351_v5   ;;  %p894_p0 = pneg %p893_p13 }
  0x23   : > { %p899_p5 = pnand %p898_p3, %p894_p0 }
  0x26   : > { %374 = vperm.xlu1 %866, %v352_v7  }
  0x29   : > { %868 = vset.pattern.permute.xlu0 %v955_v1  ;;  %379 = vperm.xlu2 %867, %v353_v8  }
  0x2a   : > { %407 = vperm.xlu0 %868, %v348_v9  }
  0x2e   : > { %412 = vperm.xlu1 %866, %v349_v10   ;;  %v795_v10 = vld [vmem:[%s1142_s5] sm:$0xff] }
  0x31   : > { %869 = vset.pattern.permute.xlu2 %v956_v6 }
  0x32   : > { %458 = vperm.xlu2 %869, %v352_v7   ;;  %871 = vset.pattern.permute.xlu0 %v956_v6 }
  0x33   : > { %470 = vperm.xlu0 %871, %v1070_v4  }
  0x36   : > { %870 = vset.pattern.permute.xlu1 %v956_v6 }
  0x37   : > { %462 = vperm.xlu1 %870, %v353_v8  }
  0x3a   : > { %466 = vperm.xlu2 %869, %v1052_v0  }
  0x3b   : > { %874 = vset.pattern.permute.xlu0 %v958_v30 }
  0x3c   : > { %599 = vperm.xlu0 %874, %v352_v7  }
  0x3f   : > { %872 = vset.pattern.permute.xlu1 %v957_v27 }
  0x40   : > { %557 = vperm.xlu1 %872, %v352_v7  }
  0x42   : > { %873 = vset.pattern.permute.xlu2 %v957_v27 }
  0x43   : > { %561 = vperm.xlu2 %873, %v353_v8  }
  0x48   : > { %565 = vperm.xlu1 %872, %v1052_v0  }
  0x4b   : > { %569 = vperm.xlu2 %873, %v1070_v4  }
  0x73   : > { %v418_v16 = vpop.permute.xlu2 %417 }
  0x7b   : > { %v423_v19 = vpop.permute.xlu2 %422 }
  0x83   : > { %v380_v31 = vpop.permute.xlu2 %379 }
  0x88   : > { %v385_v15 = vpop.permute.xlu1 %384 }
  0x8a   : > { %v359_v17 = vpop.permute.xlu0 %358 }
  0x8b   : > { %v361_v20 = vperm.slane %v359_v17, 0 }
  0x8c   : > { %v459_v12 = vpop.permute.xlu2 %458 }
  0x8d   : > { %v362_v23 = vmul.f32 %v361_v20, %v346_v11  ;;  %v796_v11 = vld [vmem:[%s1142_s5 + $0x8] sm:$0xff] }
  0x90   : > { %v390_v18 = vpop.permute.xlu1 %389 }
  0x93   : > { %v365_v21 = vpop.permute.xlu0 %364 }
  0x94   : > { %v367_v22 = vperm.slane %v365_v21, 0 }
  0x96   : > { %v368_v24 = vmul.f32 %v367_v22, %v345_v13 }
  0x98   : > { %v375_v25 = vpop.permute.xlu1 %374  ;;  %v369_v26 = vadd.f32 %v368_v24, %v362_v23 }
  0x9a   : > { %v393_v28 = vperm.slane %v369_v26, 0  ;;  %v394_v29 = vperm.slane %v369_v26, 1 }
  0x9c   : > { %v401_v32 = vmul.f32 %v393_v28, %v385_v15  ;;  %v402_v33 = vmul.f32 %v394_v29, %v385_v15  ;;  %v403_v34 = vmul.f32 %v393_v28, %v390_v18  ;;  %v404_v35 = vmul.f32 %v394_v29, %v390_v18  ;;  %v408_v36 = vpop.permute.xlu0 %407  ;;  %v467_v15 = vpop.permute.xlu2 %466 }
  0x9d   : > { %v397_v37 = vmul.f32 %v393_v28, %v375_v25  ;;  %v398_v38 = vmul.f32 %v394_v29, %v375_v25  ;;  %v399_v39 = vmul.f32 %v393_v28, %v380_v31  ;;  %v400_v40 = vmul.f32 %v394_v29, %v380_v31 }
  0x9e   : > { %v429_v41 = vadd.f32 %v418_v16, %v401_v32  ;;  %v430_v42 = vadd.f32 %v418_v16, %v402_v33  ;;  %v431_v43 = vadd.f32 %v423_v19, %v403_v34  ;;  %v432_v44 = vadd.f32 %v423_v19, %v404_v35 }
  0x9f   : > { %v425_v46 = vadd.f32 %v408_v36, %v397_v37  ;;  %v426_v47 = vadd.f32 %v408_v36, %v398_v38 }
  0xa0   : > { %v413_v45 = vpop.permute.xlu1 %412  ;;  %v437_v50 = vmax.f32 %v429_v41, 0.0  ;;  %v438_v51 = vmax.f32 %v430_v42, 0.0  ;;  %v439_v52 = vmax.f32 %v431_v43, 0.0  ;;  %v440_v53 = vmax.f32 %v432_v44, 0.0 }
  0xa1   : > { %v427_v48 = vadd.f32 %v413_v45, %v399_v39  ;;  %v428_v49 = vadd.f32 %v413_v45, %v400_v40  ;;  %v433_v54 = vmax.f32 %v425_v46, 0.0  ;;  %v434_v55 = vmax.f32 %v426_v47, 0.0 }
  0xa2   : > { %v443_v58 = vpack.c.bf16 %v438_v51, %v437_v50  ;;  %v444_v59 = vpack.c.bf16 %v440_v53, %v439_v52 }
  0xa3   : > { %v435_v56 = vmax.f32 %v427_v48, 0.0  ;;  %v436_v57 = vmax.f32 %v428_v49, 0.0  ;;  %v441_v60 = vpack.c.bf16 %v434_v55, %v433_v54 }
  0xa4   : > { %447 = vst [vmem:[#allocation2 + $0x10] sm:$0xff] %v443_v58  ;;  %v562_v23 = vpop.permute.xlu2 %561 }
  0xa5   : > { %v442_v61 = vpack.c.bf16 %v436_v57, %v435_v56  ;;  %448 = vst [vmem:[#allocation2 + $0x18] sm:$0xff] %v444_v59  ;;  %v471_v34 = vpop.permute.xlu0 %470 }
  0xa6   : > { %445 = vst [vmem:[#allocation2] sm:$0xff] %v441_v60 }
  0xa7   : > { %446 = vst [vmem:[#allocation2 + $0x8] sm:$0xff] %v442_v61 }
  0xa9   : > { %v463_v13 = vpop.permute.xlu1 %462 }
  0xab   : > { %v780_v62 = vld [vmem:[#allocation2 + $0x10] sm:$0xf]  ;;  %v799_v63 = vld [vmem:[#allocation2 + $0x14] sm:$0xf] }
  0xac   : > { %v800_v1 = vld [vmem:[#allocation2 + $0x14] sm:$0xf0]  ;;  %v782_v2 = vld [vmem:[#allocation2 + $0x18] sm:$0xf0]  ;;  %v570_v51 = vpop.permute.xlu2 %569 }
  0xad   : > { %v781_v3 = vor.u32 %v800_v1, %v780_v62  ;;  %v785_v5 = vor.u32 %v799_v63, %v782_v2  ;;  %v772_v6 = vld [vmem:[#allocation2] sm:$0xf]  ;;  %v797_v0 = vld [vmem:[#allocation2 + $0x4] sm:$0xf] }
  0xae   : > { %v798_v7 = vld [vmem:[#allocation2 + $0x4] sm:$0xf0]  ;;  %v774_v4 = vld [vmem:[#allocation2 + $0x8] sm:$0xf0] }
  0xaf   : > { %516 = vmatpush.bf16.msra.mxu0 %v781_v3  ;;  %801 = vmatpush.bf16.msra.mxu2 %v781_v3  ;;  %v773_v8 = vor.u32 %v798_v7, %v772_v6  ;;  %v777_v9 = vor.u32 %v797_v0, %v774_v4  ;;  %v600_v6 = vpop.permute.xlu0 %599 }
  0xb0   : > { %535 = vmatpush.bf16.msra.mxu1 %v785_v5  ;;  %803 = vmatpush.bf16.msra.mxu3 %v785_v5 }
  0xb2   : > { %v558_v19 = vpop.permute.xlu1 %557 }
  0xb3   : > { %517 = vmatpush.bf16.msra.mxu0 %v773_v8  ;;  %802 = vmatpush.bf16.msra.mxu2 %v773_v8  ;;  %v605_v8 = vperm.slane %v1088_v14, 0 }
  0xb4   : > { %536 = vmatpush.bf16.msra.mxu1 %v777_v9  ;;  %804 = vmatpush.bf16.msra.mxu3 %v777_v9  ;;  %v606_v9 = vperm.slane %v1088_v14, 1 }
  0xb6   : > { %786 = vmatmul.msk.bf16.vlgmr.msra.gmra.mxu0 %vm503_vm0, %v795_v10  ;;  %787 = vmatmul.msk.bf16.vlgmr.msra.gmra.mxu2 %vm503_vm0, %v796_v11 }
  0xb7   : > { %788 = vmatmul.msk.bf16.vlgmr.msra.gmra.mxu1 %vm503_vm0, %v795_v10  ;;  %789 = vmatmul.msk.bf16.vlgmr.msra.gmra.mxu3 %vm503_vm0, %v796_v11 }
  0xba   : > { %v566_v45 = vpop.permute.xlu1 %565 }
 0x133   : > { %v519_v16 = vpop.f32.mrf.mxu0 }
 0x134   : > { %v538_v17 = vpop.f32.mrf.mxu1  ;;  %v520_v18 = vadd.f32 %v519_v16, %v459_v12 }
 0x135   : > { %v539_v20 = vadd.f32 %v538_v17, %v459_v12 }
 0x136   : > { %v548_v25 = vmax.f32 %v520_v18, 0.0 }
 0x137   : > { %v549_v29 = vmax.f32 %v539_v20, 0.0 }
 0x138   : > { %v572_v35 = vmul.f32 %v558_v19, %v548_v25 }
 0x139   : > { %v524_v21 = vpop.f32.mrf.mxu2  ;;  %v573_v38 = vmul.f32 %v558_v19, %v549_v29 }
 0x13a   : > { %v543_v22 = vpop.f32.mrf.mxu3  ;;  %v525_v26 = vadd.f32 %v524_v21, %v467_v15 }
 0x13b   : > { %v521_v24 = vpop.f32.mrf.mxu0  ;;  %v544_v30 = vadd.f32 %v543_v22, %v467_v15  ;;  %v621_v15 = vlaneseq }
 0x13c   : > { %v522_v27 = vadd.f32 %v521_v24, %v463_v13  ;;  %v540_v28 = vpop.f32.mrf.mxu1  ;;  %v552_v36 = vmax.f32 %v525_v26, 0.0 }
 0x13d   : > { %v541_v31 = vadd.f32 %v540_v28, %v463_v13  ;;  %v553_v39 = vmax.f32 %v544_v30, 0.0  ;;  %vm623_vm2 = vcmp.lt.s32.totalorder %v621_v15, 256 }
 0x13e   : > { %v550_v32 = vmax.f32 %v522_v27, 0.0  ;;  %v576_v48 = vmul.f32 %v566_v45, %v552_v36 }
 0x13f   : > { %v551_v33 = vmax.f32 %v541_v31, 0.0  ;;  %v577_v50 = vmul.f32 %v566_v45, %v553_v39 }
 0x140   : > { %v574_v37 = vmul.f32 %v562_v23, %v550_v32 }
 0x141   : > { %v575_v40 = vmul.f32 %v562_v23, %v551_v33  ;;  %v526_v41 = vpop.f32.mrf.mxu2 }
 0x142   : > { %v580_v42 = vadd.f32 %v574_v37, %v572_v35  ;;  %v527_v43 = vadd.f32 %v526_v41, %v471_v34  ;;  %v545_v44 = vpop.f32.mrf.mxu3 }
 0x143   : > { %v589_v46 = vadd.f32 %v575_v40, %v573_v38  ;;  %v546_v47 = vadd.f32 %v545_v44, %v471_v34 }
 0x144   : > { %v554_v49 = vmax.f32 %v527_v43, 0.0  ;;  %v581_v54 = vadd.f32 %v580_v42, %v576_v48 }
 0x145   : > { %v555_v52 = vmax.f32 %v546_v47, 0.0  ;;  %v590_v56 = vadd.f32 %v589_v46, %v577_v50 }
 0x146   : > { %v578_v53 = vmul.f32 %v570_v51, %v554_v49 }
 0x147   : > { %v579_v55 = vmul.f32 %v570_v51, %v555_v52 }
 0x148   : > { %v582_v57 = vadd.f32 %v581_v54, %v578_v53 }
 0x149   : > { %v591_v58 = vadd.f32 %v590_v56, %v579_v55 }
 0x14a   : > { %v583_v59 = vrot.slane %v582_v57, 4 }
 0x14b   : > { %v592_v60 = vrot.slane %v591_v58, 4 }
 0x14c   : > { %v584_v61 = vadd.f32 %v583_v59, %v582_v57 }
 0x14d   : > { %v593_v62 = vadd.f32 %v592_v60, %v591_v58 }
 0x14e   : > { %v585_v63 = vrot.slane %v584_v61, 2 }
 0x14f   : > { %v594_v1 = vrot.slane %v593_v62, 2 }
 0x150   : > { %v586_v2 = vadd.f32 %v585_v63, %v584_v61 }
 0x151   : > { %v595_v3 = vadd.f32 %v594_v1, %v593_v62 }
 0x152   : > { %v587_v5 = vrot.slane %v586_v2, 1 }
 0x153   : > { %v596_v7 = vrot.slane %v595_v3, 1 }
 0x154   : > { %v588_v0 = vadd.f32 %v587_v5, %v586_v2 }
 0x155   : > { %v597_v4 = vadd.f32 %v596_v7, %v595_v3 }
 0x156   : > { %v602_v10 = vadd.f32 %v600_v6, %v588_v0 }
 0x157   : > { %v603_v11 = vadd.f32 %v600_v6, %v597_v4 }
 0x158   : > { %v609_v12 = vsub.f32 %v602_v10, %v605_v8 }
 0x159   : > { %v610_v13 = vsub.f32 %v603_v11, %v606_v9 }
 0x15a   : > { %v611_v17 = vmul.f32 %v609_v12, %v609_v12 }
 0x15b   : > { %v612_v16 = vmul.f32 %v610_v13, %v610_v13 }
 0x15d   : > { %v617_v18 = vrot.slane %v612_v16, 7 }
 0x15f   : > { %v619_v14 = vsel %vm618_vm1, %v611_v17, %v617_v18 }
 0x160   : > { %625 = vst.msk [vmem:[%s317_s17] sm:$0x3] %vm623_vm2, %v619_v14 }
 0x161   : > { %902 = shalt.err (!%p899_p5)
}
 0x162   : > { %805 = dma.vmem_to_hbm [thread:$0]  (%p1034_p4), %s642_s18, 32, %s644_s19, %s627_s24  }
 0x163 PF: > { %p811_p6 = scmp.ge.s32.totalorder %s953_s26, 2  ;;  %s655_s8 = sand.u32 1, %s933_s21  }
 0x164   : > { %s656_s14 = scalar_lea.sflag [#allocation4], %s655_s8 }
 0x165   : > { %p808_p7 = pnand %p811_p6, %p1041_p8 }
 0x167   : > { %p809_p9 = pneg %p808_p7 }
 0x169   : > { %928 = dma.done.wait (%p809_p9), %s656_s14, 32  }
 0x16a   : > { %930 = vsyncadd (%p809_p9), %s656_s14, 4294967264  ;;  %s19_s26 = sadd.s32 1, %s953_s26   ;;  %s1146_s21 = smov %s937_s22 }
 0x16b   : > { %p16_p10 = scmp.ge.s32.totalorder %s19_s26, 4   ;;  %s1147_s22 = smov %s941_s23 }
 0x16c   : > { %s1148_s23 = smov %s1047_s10  ;;  %s1149_s24 = smov %s949_s25 }
 0x16d   : > { %s1150_s25 = smov %s1152_s29  ;;  %18 = sbr.rel (!%p16_p10) target bundleno = 4 (0x4), region = 88 }
 0x172   :  { %662 = vsyncpa [#allocation4], 1 }
 0x173   :  { %664 = vsyncpa [#allocation4 + $0x1], 1 }

</bundles_post_ra>
